<compile_context>
chip_gen: v6e
topology: v6e:2x2x1
jax: 0.10.0
libtpu: 0.0.40
codegen_flags: <defaults>
</compile_context>

<pallas_src>
import jax
import jax.numpy as jnp
from jax.experimental import pallas as pl
from jax.experimental.pallas import tpu as pltpu

B = 256    # batch per triplet branch (demo size; any B works via padding)
D = 32     # input feature dim
H = 64     # hidden dim
E = 16     # embedding dim


def _embed_kernel(x_ref, w1_ref, b1_ref, w2_ref, b2_ref, o_ref):
    # One (TM, D) @ (D, H) @ (H, E) pass per grid step; weights are resident.
    h = jnp.dot(x_ref[...], w1_ref[...],
                preferred_element_type=jnp.float32) + b1_ref[...]     # (TM, H)
    h = jnp.maximum(h, 0.0)                                           # ReLU
    out = jnp.dot(h, w2_ref[...],
                  preferred_element_type=jnp.float32) + b2_ref[...]   # (TM, E)
    o_ref[...] = out.astype(o_ref.dtype)


def triplet_net(x1, x2, x3, w1, b1, w2, b2, *, block_m=256):
    """Shared embedding net applied to x1/x2/x3 via ONE batched pallas_call."""
    b_, d_ = x1.shape
    h_ = w1.shape[1]
    e_ = w2.shape[1]

    # Fold the triplet axis into the batch: (3B, D).  This wrapper-side
    # concat is ~tens of KiB and fuses into the surrounding XLA program.
    x = jnp.concatenate([x1, x2, x3], axis=0)
    m = x.shape[0]

    # Single shot if everything fits one tile, else grid over M.
    tm = m if m <= block_m else block_m
    m_pad = pl.cdiv(m, tm) * tm
    if m_pad != m:
        x = jnp.pad(x, ((0, m_pad - m), (0, 0)))

    out = pl.pallas_call(
        _embed_kernel,
        out_shape=jax.ShapeDtypeStruct((m_pad, e_), jnp.float32),
        grid=(m_pad // tm,),
        in_specs=[
            # Activations: tiled over M.  (tm, D): tm % 8 == 0 (or == full M),
            # D equals the full array dim, so the (8,128) tiling rule holds.
            pl.BlockSpec((tm, d_), lambda i: (i, 0)),
            # Shared parameters: constant block index -> DMA'd once, then
            # resident in VMEM across all grid steps / both v7x cores.
            pl.BlockSpec((d_, h_), lambda i: (0, 0)),   # W1
            pl.BlockSpec((1, h_), lambda i: (0, 0)),    # b1 (full-dim block)
            pl.BlockSpec((h_, e_), lambda i: (0, 0)),   # W2
            pl.BlockSpec((1, e_), lambda i: (0, 0)),    # b2 (full-dim block)
        ],
        # E=16 < 128 lanes => masked vst; unavoidable unless the triplet-loss
        # consumer is fused in-kernel (then the slab never leaves VMEM).
        out_specs=pl.BlockSpec((tm, e_), lambda i: (i, 0)),
        compiler_params=pltpu.CompilerParams(
            dimension_semantics=("parallel",)),
    )(x, w1, b1.reshape(1, h_), w2, b2.reshape(1, e_))

    # Forward must return three arrays; slice the lane-dense slab once here.
    # TODO(synk): a fused triplet-margin-loss consumer should take `out`
    # directly (or be fused into the kernel) instead of these slices.
    return out[:b_], out[b_:2 * b_], out[2 * b_:3 * b_]


def _embed_ref(x, w1, b1, w2, b2):
    h = jnp.maximum(x @ w1 + b1, 0.0)
    return h @ w2 + b2


if __name__ == "__main__":
    key = jax.random.PRNGKey(0)
    k1, k2, k3, kw1, kb1, kw2, kb2 = jax.random.split(key, 7)

    # Deterministic synthetic inputs (anchor, positive, negative)
    x1 = jax.random.normal(k1, (B, D), dtype=jnp.float32)
    x2 = jax.random.normal(k2, (B, D), dtype=jnp.float32)
    x3 = jax.random.normal(k3, (B, D), dtype=jnp.float32)

    # Deterministic synthetic parameters of the shared embedding net
    w1 = jax.random.normal(kw1, (D, H), dtype=jnp.float32) * 0.1
    b1 = jax.random.normal(kb1, (H,), dtype=jnp.float32) * 0.1
    w2 = jax.random.normal(kw2, (H, E), dtype=jnp.float32) * 0.1
    b2 = jax.random.normal(kb2, (E,), dtype=jnp.float32) * 0.1

    o1, o2, o3 = jax.jit(triplet_net)(x1, x2, x3, w1, b1, w2, b2)
    jax.block_until_ready((o1, o2, o3))

    # Correctness check against a plain-JAX reference of the same forward pass
    r1 = _embed_ref(x1, w1, b1, w2, b2)
    r2 = _embed_ref(x2, w1, b1, w2, b2)
    r3 = _embed_ref(x3, w1, b1, w2, b2)
    assert jnp.allclose(o1, r1, atol=1e-5), "branch 1 mismatch"
    assert jnp.allclose(o2, r2, atol=1e-5), "branch 2 mismatch"
    assert jnp.allclose(o3, r3, atol=1e-5), "branch 3 mismatch"

    print("KERNEL_OK")
</pallas_src>

<mosaic_0001>
module attributes {stable_mosaic.version = 11 : i64} {
  func.func @_embed_kernel(%arg0: i32, %arg1: memref<256x32xf32, #tpu.memory_space<vmem>>, %arg2: memref<32x64xf32, #tpu.memory_space<vmem>>, %arg3: memref<1x64xf32, #tpu.memory_space<vmem>>, %arg4: memref<64x16xf32, #tpu.memory_space<vmem>>, %arg5: memref<1x16xf32, #tpu.memory_space<vmem>>, %arg6: memref<256x16xf32, #tpu.memory_space<vmem>>) attributes {dimension_semantics = [#tpu.dimension_semantics<parallel>], iteration_bounds = array<i64: 3>, scalar_prefetch = 0 : i64, scratch_operands = 0 : i64, tpu.core_type = #tpu.core_type<tc>, window_params = [{transform_indices = @transform_0, window_bounds = array<i64: 256, 32>}, {pipeline_mode = #tpu.pipeline_mode<synchronous>, transform_indices = @transform_1, window_bounds = array<i64: 32, 64>}, {pipeline_mode = #tpu.pipeline_mode<synchronous>, transform_indices = @transform_2, window_bounds = array<i64: 1, 64>}, {pipeline_mode = #tpu.pipeline_mode<synchronous>, transform_indices = @transform_3, window_bounds = array<i64: 64, 16>}, {pipeline_mode = #tpu.pipeline_mode<synchronous>, transform_indices = @transform_4, window_bounds = array<i64: 1, 16>}, {transform_indices = @transform_5, window_bounds = array<i64: 256, 16>}]} {
    %c0 = arith.constant 0 : index
    %c0_0 = arith.constant 0 : index
    %0 = vector.load %arg1[%c0, %c0_0] : memref<256x32xf32, #tpu.memory_space<vmem>>, vector<256x32xf32>
    %c0_1 = arith.constant 0 : index
    %c0_2 = arith.constant 0 : index
    %1 = vector.load %arg2[%c0_1, %c0_2] : memref<32x64xf32, #tpu.memory_space<vmem>>, vector<32x64xf32>
    %cst = arith.constant dense<0.000000e+00> : vector<256x64xf32>
    %2 = tpu.matmul %0, %1, %cst {dimension_numbers = #tpu.dot_dimension_numbers<[1], [0], [0], [1], [0, 0, 1, 1], [], []>} : vector<256x32xf32>, vector<32x64xf32>, vector<256x64xf32> -> vector<256x64xf32>
    %c0_3 = arith.constant 0 : index
    %c0_4 = arith.constant 0 : index
    %3 = vector.load %arg3[%c0_3, %c0_4] : memref<1x64xf32, #tpu.memory_space<vmem>>, vector<1x64xf32>
    %4 = vector.broadcast %3 : vector<1x64xf32> to vector<256x64xf32>
    %5 = arith.addf %2, %4 : vector<256x64xf32>
    %cst_5 = arith.constant 0.000000e+00 : f32
    %6 = vector.broadcast %cst_5 : f32 to vector<256x64xf32>
    %7 = arith.maximumf %5, %6 : vector<256x64xf32>
    %c0_6 = arith.constant 0 : index
    %c0_7 = arith.constant 0 : index
    %8 = vector.load %arg4[%c0_6, %c0_7] : memref<64x16xf32, #tpu.memory_space<vmem>>, vector<64x16xf32>
    %cst_8 = arith.constant dense<0.000000e+00> : vector<256x16xf32>
    %9 = tpu.matmul %7, %8, %cst_8 {dimension_numbers = #tpu.dot_dimension_numbers<[1], [0], [0], [1], [0, 0, 1, 1], [], []>} : vector<256x64xf32>, vector<64x16xf32>, vector<256x16xf32> -> vector<256x16xf32>
    %c0_9 = arith.constant 0 : index
    %c0_10 = arith.constant 0 : index
    %10 = vector.load %arg5[%c0_9, %c0_10] : memref<1x16xf32, #tpu.memory_space<vmem>>, vector<1x16xf32>
    %11 = vector.broadcast %10 : vector<1x16xf32> to vector<256x16xf32>
    %12 = arith.addf %9, %11 : vector<256x16xf32>
    %c0_11 = arith.constant 0 : index
    %c0_12 = arith.constant 0 : index
    %13 = vector.load %arg6[%c0_11, %c0_12] : memref<256x16xf32, #tpu.memory_space<vmem>>, vector<256x16xf32>
    tpu.vector_store %arg6[%c0_11, %c0_12], %12 {strides = array<i32>} : memref<256x16xf32, #tpu.memory_space<vmem>>, vector<256x16xf32>,
    return
  }
  func.func @transform_0(%arg0: i32) -> (i32, i32) {
    %c0_i32 = arith.constant 0 : i32
    %c0_i32_0 = arith.constant 0 : i32
    return %arg0, %c0_i32 : i32, i32
  }
  func.func @transform_1(%arg0: i32) -> (i32, i32) {
    %c0_i32 = arith.constant 0 : i32
    %c0_i32_0 = arith.constant 0 : i32
    %c0_i32_1 = arith.constant 0 : i32
    return %c0_i32, %c0_i32_0 : i32, i32
  }
  func.func @transform_2(%arg0: i32) -> (i32, i32) {
    %c0_i32 = arith.constant 0 : i32
    %c0_i32_0 = arith.constant 0 : i32
    %c0_i32_1 = arith.constant 0 : i32
    return %c0_i32, %c0_i32_0 : i32, i32
  }
  func.func @transform_3(%arg0: i32) -> (i32, i32) {
    %c0_i32 = arith.constant 0 : i32
    %c0_i32_0 = arith.constant 0 : i32
    %c0_i32_1 = arith.constant 0 : i32
    return %c0_i32, %c0_i32_0 : i32, i32
  }
  func.func @transform_4(%arg0: i32) -> (i32, i32) {
    %c0_i32 = arith.constant 0 : i32
    %c0_i32_0 = arith.constant 0 : i32
    %c0_i32_1 = arith.constant 0 : i32
    return %c0_i32, %c0_i32_0 : i32, i32
  }
  func.func @transform_5(%arg0: i32) -> (i32, i32) {
    %c0_i32 = arith.constant 0 : i32
    %c0_i32_0 = arith.constant 0 : i32
    return %arg0, %c0_i32 : i32, i32
  }
}

</mosaic_0001>

<bundles_post_ra>
// kernel: triplet_net.1
= control target key start
LH: loop header
LB: loop body
LE: loop exit
PB: predicated region body
PF: predicated region fallthrough
CT: control target
= control target key end

     0   :  { %s1386_s18 = smov 0   ;;  %s1684_s0 = inlined_call_operand.vmem [shape: f32[768,32], index: 0, kind: input, shape index: {}]   ;;  %s1685_s1 = inlined_call_operand.vmem [shape: f32[32,64], index: 1, kind: input, shape index: {}]   ;;  %s1686_s2 = inlined_call_operand.vmem [shape: f32[1,64], index: 2, kind: input, shape index: {}]   ;;  %s1687_s3 = inlined_call_operand.vmem [shape: f32[64,16], index: 3, kind: input, shape index: {}]   ;;  %s1688_s4 = inlined_call_operand.vmem [shape: f32[1,16], index: 4, kind: input, shape index: {}]   ;;  %s1689_s5 = inlined_call_operand.vmem [shape: f32[768,16], index: 5, kind: output, shape index: {}]  }
   0x1 LB: > { %s1051_s19 = sadd.s32 4294967295, %s1354_s18   ;;  %p1055_p0 = scmp.ge.s32.totalorder %s1354_s18, 1  ;;  %s1354_s18 = sphi %s1386_s18, %s15_s18  }
   0x2   : > { %p188_p1 = scmp.lt.s32.totalorder %s1354_s18, 4 }
   0x4   : > { %p189_p2 = pnand %p1055_p0, %p188_p1 }
   0x5   : > { %s1056_s24 = sshll.u32 (!%p189_p2), %s1051_s19, 5 }
   0x6   : > { %192 = sbr.rel (%p189_p2) target bundleno = 478 (0x1de), region = 40  ;;  %p217_p3 = scmp.lt.s32.totalorder (!%p189_p2), %s1056_s24, 95 }
   0xb   : > { %v263_v0 = vld [vmem:[%s1685_s1 + $0x18] sm:$0xff]  ;;  %v262_v1 = vld [vmem:[%s1685_s1 + $0x10] sm:$0xff]  ;;  %v261_v3 = vld [vmem:[%s1685_s1 + $0x8] sm:$0xff]  ;;  %s1691_s24 = smov (!%p217_p3, %s1056_s24), 95  ;;  %vm271_vm0 = vcmask 261120   ;;  %vm640_vm1 = vcmask 523264  }
   0xc   : > { %1204 = vmatprep.subr.mxu0 %v263_v0  ;;  %v632_v2 = vld [vmem:[%s1687_s3 + $0x38] sm:$0xff]  ;;  %v631_v4 = vld [vmem:[%s1687_s3 + $0x30] sm:$0xff]  ;;  %v260_v5 = vld [vmem:[%s1685_s1] sm:$0xff]  ;;  %s1057_s8 = sshll.u32 %s1691_s24, 3  ;;  %vm962_vm2 = vcmask 130048  }
   0xd   : > { %1205 = vmatpush3.msra.mxu0 %v263_v0  ;;  %1324 = vmatprep.subr.mxu1 %v632_v2  ;;  %v630_v6 = vld [vmem:[%s1687_s3 + $0x28] sm:$0xff]  ;;  %s1423_s13 = scalar_lea.vmem %s1684_s0, %s1057_s8  ;;  %v629_v11 = vld [vmem:[%s1687_s3 + $0x20] sm:$0xff]  ;;  %v628_v40 = vld [vmem:[%s1687_s3 + $0x18] sm:$0xff]  ;;  %s1583_s7 = scalar_lea.vmem %s1689_s5, %s1057_s8 }
   0xe   : > { %1206 = vmatprep.subr.mxu0 %v262_v1  ;;  %1332 = vmatpush3.msra.mxu1 %v632_v2  ;;  %v228_v7 = vld [vmem:[%s1423_s13] sm:$0xff]  ;;  %v229_v8 = vld [vmem:[%s1423_s13 + $0x8] sm:$0xff]  ;;  %v230_v9 = vld [vmem:[%s1423_s13 + $0x10] sm:$0xff] }
   0xf   : > { %1207 = vmatpush3.msra.mxu0 %v262_v1  ;;  %1325 = vmatprep.subr.mxu1 %v631_v4  ;;  %v231_v10 = vld [vmem:[%s1423_s13 + $0x18] sm:$0xff]  ;;  %v232_v12 = vld [vmem:[%s1423_s13 + $0x20] sm:$0xff]  ;;  %v233_v13 = vld [vmem:[%s1423_s13 + $0x28] sm:$0xff] }
  0x10   : > { %1208 = vmatprep.subr.mxu0 %v261_v3  ;;  %1333 = vmatpush3.msra.mxu1 %v631_v4  ;;  %v234_v14 = vld [vmem:[%s1423_s13 + $0x30] sm:$0xff]  ;;  %v235_v15 = vld [vmem:[%s1423_s13 + $0x38] sm:$0xff]  ;;  %v236_v16 = vld [vmem:[%s1423_s13 + $0x40] sm:$0xff] }
  0x11   : > { %1209 = vmatpush3.msra.mxu0 %v261_v3  ;;  %1326 = vmatprep.subr.mxu1 %v630_v6  ;;  %v237_v17 = vld [vmem:[%s1423_s13 + $0x48] sm:$0xff]  ;;  %v238_v18 = vld [vmem:[%s1423_s13 + $0x50] sm:$0xff]  ;;  %v239_v19 = vld [vmem:[%s1423_s13 + $0x58] sm:$0xff] }
  0x12   : > { %1210 = vmatprep.subr.mxu0 %v260_v5  ;;  %1334 = vmatpush3.msra.mxu1 %v630_v6  ;;  %v240_v20 = vld [vmem:[%s1423_s13 + $0x60] sm:$0xff]  ;;  %v241_v21 = vld [vmem:[%s1423_s13 + $0x68] sm:$0xff]  ;;  %v242_v22 = vld [vmem:[%s1423_s13 + $0x70] sm:$0xff] }
  0x13   : > { %1211 = vmatpush3.msra.mxu0 %v260_v5  ;;  %1212 = vmatprep.mubr.msk.f32.mxu0 %vm271_vm0, %v228_v7  ;;  %v243_v23 = vld [vmem:[%s1423_s13 + $0x78] sm:$0xff]  ;;  %v244_v24 = vld [vmem:[%s1423_s13 + $0x80] sm:$0xff]  ;;  %v245_v25 = vld [vmem:[%s1423_s13 + $0x88] sm:$0xff] }
  0x14   : > { %1213 = vmatmul.mubr.msk.f32.vlgmr.msra.gmra.mxu0 %vm271_vm0, %v229_v8  ;;  %1260 = vmatprep.subr.mxu0 %v632_v2  ;;  %v246_v26 = vld [vmem:[%s1423_s13 + $0x90] sm:$0xff]  ;;  %v247_v27 = vld [vmem:[%s1423_s13 + $0x98] sm:$0xff]  ;;  %v248_v28 = vld [vmem:[%s1423_s13 + $0xa0] sm:$0xff] }
  0x15   : > { %1215 = vmatprep.mubr.msk.f32.mxu0 %vm271_vm0, %v230_v9  ;;  %1261 = vmatpush3.msra.mxu0 %v632_v2  ;;  %v249_v29 = vld [vmem:[%s1423_s13 + $0xa8] sm:$0xff]  ;;  %v250_v30 = vld [vmem:[%s1423_s13 + $0xb0] sm:$0xff]  ;;  %v251_v31 = vld [vmem:[%s1423_s13 + $0xb8] sm:$0xff] }
  0x16   : > { %1262 = vmatprep.subr.mxu0 %v631_v4  ;;  %1327 = vmatprep.subr.mxu1 %v629_v11  ;;  %v252_v32 = vld [vmem:[%s1423_s13 + $0xc0] sm:$0xff]  ;;  %v253_v33 = vld [vmem:[%s1423_s13 + $0xc8] sm:$0xff]  ;;  %v254_v34 = vld [vmem:[%s1423_s13 + $0xd0] sm:$0xff] }
  0x17   : > { %1263 = vmatpush3.msra.mxu0 %v631_v4  ;;  %1335 = vmatpush3.msra.mxu1 %v629_v11  ;;  %v255_v35 = vld [vmem:[%s1423_s13 + $0xd8] sm:$0xff]  ;;  %v256_v36 = vld [vmem:[%s1423_s13 + $0xe0] sm:$0xff]  ;;  %v257_v37 = vld [vmem:[%s1423_s13 + $0xe8] sm:$0xff] }
  0x18   : > { %1216 = vmatmul.mubr.msk.f32.gmra.mxu0 %vm271_vm0, %v231_v10  ;;  %1264 = vmatprep.subr.mxu0 %v630_v6  ;;  %v258_v38 = vld [vmem:[%s1423_s13 + $0xf0] sm:$0xff]  ;;  %v259_v39 = vld [vmem:[%s1423_s13 + $0xf8] sm:$0xff]  ;;  %v626_v42 = vld [vmem:[%s1687_s3 + $0x8] sm:$0xff] }
  0x19   : > { %1218 = vmatprep.mubr.msk.f32.mxu0 %vm271_vm0, %v232_v12  ;;  %1265 = vmatpush3.msra.mxu0 %v630_v6  ;;  %v627_v41 = vld [vmem:[%s1687_s3 + $0x10] sm:$0xff]  ;;  %v625_v43 = vld [vmem:[%s1687_s3] sm:$0xff] }
  0x1a   : > { %1266 = vmatprep.subr.mxu0 %v629_v11  ;;  %1328 = vmatprep.subr.mxu1 %v628_v40  ;;  %v1507_v44 = vld [vmem:[%s1686_s2] ss:$0 sm:$0xff] }
  0x1b   : > { %1267 = vmatpush3.msra.mxu0 %v629_v11  ;;  %1336 = vmatpush3.msra.mxu1 %v628_v40 }
  0x1c   : > { %1219 = vmatmul.mubr.msk.f32.gmra.mxu0 %vm271_vm0, %v233_v13  ;;  %1268 = vmatprep.subr.mxu0 %v628_v40 }
  0x1d   : > { %1221 = vmatprep.mubr.msk.f32.mxu0 %vm271_vm0, %v234_v14  ;;  %1269 = vmatpush3.msra.mxu0 %v628_v40 }
  0x1e   : > { %1270 = vmatprep.subr.mxu0 %v627_v41  ;;  %1329 = vmatprep.subr.mxu1 %v627_v41 }
  0x1f   : > { %1271 = vmatpush3.msra.mxu0 %v627_v41  ;;  %1337 = vmatpush3.msra.mxu1 %v627_v41 }
  0x20   : > { %1222 = vmatmul.mubr.msk.f32.gmra.mxu0 %vm271_vm0, %v235_v15  ;;  %1272 = vmatprep.subr.mxu0 %v626_v42 }
  0x21   : > { %1224 = vmatprep.mubr.msk.f32.mxu0 %vm271_vm0, %v236_v16  ;;  %1330 = vmatprep.subr.mxu1 %v626_v42 }
  0x22   : > { %1273 = vmatpush3.msra.mxu0 %v626_v42  ;;  %1338 = vmatpush3.msra.mxu1 %v626_v42 }
  0x23   : > { %1274 = vmatprep.subr.mxu0 %v625_v43  ;;  %1331 = vmatprep.subr.mxu1 %v625_v43 }
  0x24   : > { %1225 = vmatmul.mubr.msk.f32.gmra.mxu0 %vm271_vm0, %v237_v17  ;;  %1339 = vmatpush3.msra.mxu1 %v625_v43 }
  0x25   : > { %1227 = vmatprep.mubr.msk.f32.mxu0 %vm271_vm0, %v238_v18  ;;  %1275 = vmatpush3.msra.mxu0 %v625_v43 }
  0x28   : > { %1228 = vmatmul.mubr.msk.f32.gmra.mxu0 %vm271_vm0, %v239_v19 }
  0x29   : > { %1230 = vmatprep.mubr.msk.f32.mxu0 %vm271_vm0, %v240_v20 }
  0x2c   : > { %1231 = vmatmul.mubr.msk.f32.gmra.mxu0 %vm271_vm0, %v241_v21 }
  0x2d   : > { %1233 = vmatprep.mubr.msk.f32.mxu0 %vm271_vm0, %v242_v22 }
  0x30   : > { %1234 = vmatmul.mubr.msk.f32.gmra.mxu0 %vm271_vm0, %v243_v23 }
  0x31   : > { %1236 = vmatprep.mubr.msk.f32.mxu0 %vm271_vm0, %v244_v24 }
  0x34   : > { %1237 = vmatmul.mubr.msk.f32.gmra.mxu0 %vm271_vm0, %v245_v25 }
  0x35   : > { %1239 = vmatprep.mubr.msk.f32.mxu0 %vm271_vm0, %v246_v26 }
  0x38   : > { %1240 = vmatmul.mubr.msk.f32.gmra.mxu0 %vm271_vm0, %v247_v27 }
  0x39   : > { %1242 = vmatprep.mubr.msk.f32.mxu0 %vm271_vm0, %v248_v28 }
  0x3c   : > { %1243 = vmatmul.mubr.msk.f32.gmra.mxu0 %vm271_vm0, %v249_v29 }
  0x3d   : > { %1245 = vmatprep.mubr.msk.f32.mxu0 %vm271_vm0, %v250_v30 }
  0x40   : > { %1246 = vmatmul.mubr.msk.f32.gmra.mxu0 %vm271_vm0, %v251_v31 }
  0x41   : > { %1248 = vmatprep.mubr.msk.f32.mxu0 %vm271_vm0, %v252_v32 }
  0x44   : > { %1249 = vmatmul.mubr.msk.f32.gmra.mxu0 %vm271_vm0, %v253_v33 }
  0x45   : > { %1251 = vmatprep.mubr.msk.f32.mxu0 %vm271_vm0, %v254_v34 }
  0x48   : > { %1252 = vmatmul.mubr.msk.f32.gmra.mxu0 %vm271_vm0, %v255_v35 }
  0x49   : > { %1254 = vmatprep.mubr.msk.f32.mxu0 %vm271_vm0, %v256_v36 }
  0x4c   : > { %1255 = vmatmul.mubr.msk.f32.gmra.mxu0 %vm271_vm0, %v257_v37 }
  0x4d   : > { %1257 = vmatprep.mubr.msk.f32.mxu0 %vm271_vm0, %v258_v38 }
  0x50   : > { %1258 = vmatmul.mubr.msk.f32.gmra.mxu0 %vm271_vm0, %v259_v39 }
  0xd4   : > { %v1214_v45 = vpop.f32.mrf.mxu0 }
  0xd5   : > { %v440_v46 = vadd.f32 %v1214_v45, %v1507_v44 }
  0xd6   : > { %v434_v47 = vpop.f32.mrf.mxu0 }
  0xd7   : > { %v435_v48 = vadd.f32 %v1507_v44, %v434_v47  ;;  %v594_v51 = vmax.f32 %v440_v46, 0.0 }
  0xd8   : > { %v1217_v49 = vpop.f32.mrf.mxu0 }
  0xd9   : > { %v593_v50 = vmax.f32 %v435_v48, 0.0  ;;  %v450_v52 = vadd.f32 %v1217_v49, %v1507_v44 }
  0xda   : > { %v444_v53 = vpop.f32.mrf.mxu0 }
  0xdb   : > { %v445_v54 = vadd.f32 %v1507_v44, %v444_v53  ;;  %1276 = vmatprep.mubr.msk.f32.mxu0 %vm640_vm1, %v593_v50  ;;  %v596_v57 = vmax.f32 %v450_v52, 0.0 }
  0xdc   : > { %v1220_v55 = vpop.f32.mrf.mxu0  ;;  %1277 = vmatmul.mubr.msk.f32.vlgmr.msra.gmra.mxu0 %vm640_vm1, %v594_v51 }
  0xdd   : > { %v595_v56 = vmax.f32 %v445_v54, 0.0  ;;  %v460_v58 = vadd.f32 %v1220_v55, %v1507_v44 }
  0xde   : > { %v454_v59 = vpop.f32.mrf.mxu0 }
  0xdf   : > { %v455_v60 = vadd.f32 %v1507_v44, %v454_v59  ;;  %1279 = vmatprep.mubr.msk.f32.mxu1 %vm640_vm1, %v595_v56  ;;  %v598_v63 = vmax.f32 %v460_v58, 0.0 }
  0xe0   : > { %v1223_v61 = vpop.f32.mrf.mxu0  ;;  %1280 = vmatmul.mubr.msk.f32.vlgmr.msra.gmra.mxu1 %vm640_vm1, %v596_v57 }
  0xe1   : > { %v597_v62 = vmax.f32 %v455_v60, 0.0  ;;  %v470_v0 = vadd.f32 %v1223_v61, %v1507_v44 }
  0xe2   : > { %v464_v1 = vpop.f32.mrf.mxu0 }
  0xe3   : > { %v465_v2 = vadd.f32 %v1507_v44, %v464_v1  ;;  %1282 = vmatprep.mubr.msk.f32.mxu1 %vm640_vm1, %v597_v62  ;;  %v600_v5 = vmax.f32 %v470_v0, 0.0 }
  0xe4   : > { %v1226_v3 = vpop.f32.mrf.mxu0  ;;  %1283 = vmatmul.mubr.msk.f32.gmra.mxu1 %vm640_vm1, %v598_v63 }
  0xe5   : > { %v599_v4 = vmax.f32 %v465_v2, 0.0  ;;  %v480_v6 = vadd.f32 %v1226_v3, %v1507_v44 }
  0xe6   : > { %v474_v7 = vpop.f32.mrf.mxu0 }
  0xe7   : > { %v475_v8 = vadd.f32 %v1507_v44, %v474_v7  ;;  %1285 = vmatprep.mubr.msk.f32.mxu1 %vm640_vm1, %v599_v4  ;;  %v602_v11 = vmax.f32 %v480_v6, 0.0 }
  0xe8   : > { %v1229_v9 = vpop.f32.mrf.mxu0  ;;  %1286 = vmatmul.mubr.msk.f32.gmra.mxu1 %vm640_vm1, %v600_v5 }
  0xe9   : > { %v601_v10 = vmax.f32 %v475_v8, 0.0  ;;  %v490_v12 = vadd.f32 %v1229_v9, %v1507_v44 }
  0xea   : > { %v484_v13 = vpop.f32.mrf.mxu0 }
  0xeb   : > { %v485_v14 = vadd.f32 %v1507_v44, %v484_v13  ;;  %1288 = vmatprep.mubr.msk.f32.mxu1 %vm640_vm1, %v601_v10  ;;  %v604_v17 = vmax.f32 %v490_v12, 0.0 }
  0xec   : > { %v1232_v15 = vpop.f32.mrf.mxu0  ;;  %1289 = vmatmul.mubr.msk.f32.gmra.mxu1 %vm640_vm1, %v602_v11 }
  0xed   : > { %v603_v16 = vmax.f32 %v485_v14, 0.0  ;;  %v500_v18 = vadd.f32 %v1232_v15, %v1507_v44  ;;  %v1576_v14 = vld [vmem:[%s1688_s4] ss:$0 sm:$0xff] }
  0xee   : > { %v494_v19 = vpop.f32.mrf.mxu0 }
  0xef   : > { %v495_v20 = vadd.f32 %v1507_v44, %v494_v19  ;;  %1291 = vmatprep.mubr.msk.f32.mxu1 %vm640_vm1, %v603_v16  ;;  %v606_v23 = vmax.f32 %v500_v18, 0.0 }
  0xf0   : > { %v1235_v21 = vpop.f32.mrf.mxu0  ;;  %1292 = vmatmul.mubr.msk.f32.gmra.mxu1 %vm640_vm1, %v604_v17 }
  0xf1   : > { %v605_v22 = vmax.f32 %v495_v20, 0.0  ;;  %v510_v24 = vadd.f32 %v1235_v21, %v1507_v44 }
  0xf2   : > { %v504_v25 = vpop.f32.mrf.mxu0 }
  0xf3   : > { %v505_v26 = vadd.f32 %v1507_v44, %v504_v25  ;;  %1294 = vmatprep.mubr.msk.f32.mxu1 %vm640_vm1, %v605_v22  ;;  %v608_v29 = vmax.f32 %v510_v24, 0.0 }
  0xf4   : > { %v1238_v27 = vpop.f32.mrf.mxu0  ;;  %1295 = vmatmul.mubr.msk.f32.gmra.mxu1 %vm640_vm1, %v606_v23 }
  0xf5   : > { %v607_v28 = vmax.f32 %v505_v26, 0.0  ;;  %v520_v30 = vadd.f32 %v1238_v27, %v1507_v44 }
  0xf6   : > { %v514_v31 = vpop.f32.mrf.mxu0 }
  0xf7   : > { %v515_v32 = vadd.f32 %v1507_v44, %v514_v31  ;;  %1297 = vmatprep.mubr.msk.f32.mxu1 %vm640_vm1, %v607_v28  ;;  %v610_v35 = vmax.f32 %v520_v30, 0.0 }
  0xf8   : > { %v1241_v33 = vpop.f32.mrf.mxu0  ;;  %1298 = vmatmul.mubr.msk.f32.gmra.mxu1 %vm640_vm1, %v608_v29 }
  0xf9   : > { %v609_v34 = vmax.f32 %v515_v32, 0.0  ;;  %v530_v36 = vadd.f32 %v1241_v33, %v1507_v44 }
  0xfa   : > { %v524_v37 = vpop.f32.mrf.mxu0 }
  0xfb   : > { %v525_v38 = vadd.f32 %v1507_v44, %v524_v37  ;;  %1300 = vmatprep.mubr.msk.f32.mxu1 %vm640_vm1, %v609_v34  ;;  %v612_v41 = vmax.f32 %v530_v36, 0.0 }
  0xfc   : > { %v1244_v39 = vpop.f32.mrf.mxu0  ;;  %1301 = vmatmul.mubr.msk.f32.gmra.mxu1 %vm640_vm1, %v610_v35 }
  0xfd   : > { %v611_v40 = vmax.f32 %v525_v38, 0.0  ;;  %v540_v42 = vadd.f32 %v1244_v39, %v1507_v44 }
  0xfe   : > { %v534_v43 = vpop.f32.mrf.mxu0 }
  0xff   : > { %v535_v45 = vadd.f32 %v1507_v44, %v534_v43  ;;  %1303 = vmatprep.mubr.msk.f32.mxu1 %vm640_vm1, %v611_v40  ;;  %v614_v48 = vmax.f32 %v540_v42, 0.0 }
 0x100   : > { %v1247_v46 = vpop.f32.mrf.mxu0  ;;  %1304 = vmatmul.mubr.msk.f32.gmra.mxu1 %vm640_vm1, %v612_v41 }
 0x101   : > { %v613_v47 = vmax.f32 %v535_v45, 0.0  ;;  %v550_v49 = vadd.f32 %v1247_v46, %v1507_v44 }
 0x102   : > { %v544_v50 = vpop.f32.mrf.mxu0 }
 0x103   : > { %v545_v51 = vadd.f32 %v1507_v44, %v544_v50  ;;  %1306 = vmatprep.mubr.msk.f32.mxu1 %vm640_vm1, %v613_v47  ;;  %v616_v54 = vmax.f32 %v550_v49, 0.0 }
 0x104   : > { %v1250_v52 = vpop.f32.mrf.mxu0  ;;  %1307 = vmatmul.mubr.msk.f32.gmra.mxu1 %vm640_vm1, %v614_v48 }
 0x105   : > { %v615_v53 = vmax.f32 %v545_v51, 0.0  ;;  %v560_v55 = vadd.f32 %v1250_v52, %v1507_v44 }
 0x106   : > { %v554_v56 = vpop.f32.mrf.mxu0 }
 0x107   : > { %v555_v57 = vadd.f32 %v1507_v44, %v554_v56  ;;  %1309 = vmatprep.mubr.msk.f32.mxu1 %vm640_vm1, %v615_v53  ;;  %v618_v60 = vmax.f32 %v560_v55, 0.0 }
 0x108   : > { %v1253_v58 = vpop.f32.mrf.mxu0  ;;  %1310 = vmatmul.mubr.msk.f32.gmra.mxu1 %vm640_vm1, %v616_v54 }
 0x109   : > { %v617_v59 = vmax.f32 %v555_v57, 0.0  ;;  %v570_v61 = vadd.f32 %v1253_v58, %v1507_v44 }
 0x10a   : > { %v564_v62 = vpop.f32.mrf.mxu0 }
 0x10b   : > { %v565_v63 = vadd.f32 %v1507_v44, %v564_v62  ;;  %1312 = vmatprep.mubr.msk.f32.mxu1 %vm640_vm1, %v617_v59  ;;  %v620_v2 = vmax.f32 %v570_v61, 0.0 }
 0x10c   : > { %v1256_v0 = vpop.f32.mrf.mxu0  ;;  %1313 = vmatmul.mubr.msk.f32.gmra.mxu1 %vm640_vm1, %v618_v60 }
 0x10d   : > { %v619_v1 = vmax.f32 %v565_v63, 0.0  ;;  %v580_v3 = vadd.f32 %v1256_v0, %v1507_v44 }
 0x10e   : > { %v574_v4 = vpop.f32.mrf.mxu0 }
 0x10f   : > { %v575_v5 = vadd.f32 %v1507_v44, %v574_v4  ;;  %1315 = vmatprep.mubr.msk.f32.mxu1 %vm640_vm1, %v619_v1  ;;  %v622_v8 = vmax.f32 %v580_v3, 0.0 }
 0x110   : > { %v1259_v6 = vpop.f32.mrf.mxu0  ;;  %1316 = vmatmul.mubr.msk.f32.gmra.mxu1 %vm640_vm1, %v620_v2 }
 0x111   : > { %v621_v7 = vmax.f32 %v575_v5, 0.0  ;;  %v590_v9 = vadd.f32 %v1259_v6, %v1507_v44 }
 0x112   : > { %v584_v10 = vpop.f32.mrf.mxu0 }
 0x113   : > { %v585_v11 = vadd.f32 %v1507_v44, %v584_v10  ;;  %1318 = vmatprep.mubr.msk.f32.mxu1 %vm640_vm1, %v621_v7  ;;  %v624_v13 = vmax.f32 %v590_v9, 0.0 }
 0x114   : > { %1319 = vmatmul.mubr.msk.f32.gmra.mxu1 %vm640_vm1, %v622_v8 }
 0x115   : > { %v623_v12 = vmax.f32 %v585_v11, 0.0 }
 0x117   : > { %1321 = vmatprep.mubr.msk.f32.mxu1 %vm640_vm1, %v623_v12 }
 0x118   : > { %1322 = vmatmul.mubr.msk.f32.gmra.mxu1 %vm640_vm1, %v624_v13 }
 0x19c   : > { %v1278_v44 = vpop.f32.mrf.mxu0 }
 0x19d   : > { %v809_v15 = vadd.f32 %v1278_v44, %v1576_v14 }
 0x19e   : > { %v803_v16 = vpop.f32.mrf.mxu0 }
 0x19f   : > { %964 = vst.msk [vmem:[%s1583_s7 + $0x8] sm:$0xff] %vm962_vm2, %v809_v15  ;;  %v804_v17 = vadd.f32 %v1576_v14, %v803_v16 }
 0x1a0   : > { %v1281_v18 = vpop.f32.mrf.mxu1 }
 0x1a1   : > { %963 = vst.msk [vmem:[%s1583_s7] sm:$0xff] %vm962_vm2, %v804_v17  ;;  %v819_v19 = vadd.f32 %v1281_v18, %v1576_v14 }
 0x1a2   : > { %v813_v20 = vpop.f32.mrf.mxu1 }
 0x1a3   : > { %966 = vst.msk [vmem:[%s1583_s7 + $0x18] sm:$0xff] %vm962_vm2, %v819_v19  ;;  %v814_v21 = vadd.f32 %v1576_v14, %v813_v20 }
 0x1a4   : > { %v1284_v22 = vpop.f32.mrf.mxu1 }
 0x1a5   : > { %965 = vst.msk [vmem:[%s1583_s7 + $0x10] sm:$0xff] %vm962_vm2, %v814_v21  ;;  %v829_v23 = vadd.f32 %v1284_v22, %v1576_v14 }
 0x1a6   : > { %v823_v24 = vpop.f32.mrf.mxu1 }
 0x1a7   : > { %968 = vst.msk [vmem:[%s1583_s7 + $0x28] sm:$0xff] %vm962_vm2, %v829_v23  ;;  %v824_v25 = vadd.f32 %v1576_v14, %v823_v24 }
 0x1a8   : > { %v1287_v26 = vpop.f32.mrf.mxu1 }
 0x1a9   : > { %967 = vst.msk [vmem:[%s1583_s7 + $0x20] sm:$0xff] %vm962_vm2, %v824_v25  ;;  %v839_v27 = vadd.f32 %v1287_v26, %v1576_v14 }
 0x1aa   : > { %v833_v28 = vpop.f32.mrf.mxu1 }
 0x1ab   : > { %970 = vst.msk [vmem:[%s1583_s7 + $0x38] sm:$0xff] %vm962_vm2, %v839_v27  ;;  %v834_v29 = vadd.f32 %v1576_v14, %v833_v28 }
 0x1ac   : > { %v1290_v30 = vpop.f32.mrf.mxu1 }
 0x1ad   : > { %969 = vst.msk [vmem:[%s1583_s7 + $0x30] sm:$0xff] %vm962_vm2, %v834_v29  ;;  %v849_v31 = vadd.f32 %v1290_v30, %v1576_v14 }
 0x1ae   : > { %v843_v32 = vpop.f32.mrf.mxu1 }
 0x1af   : > { %972 = vst.msk [vmem:[%s1583_s7 + $0x48] sm:$0xff] %vm962_vm2, %v849_v31  ;;  %v844_v33 = vadd.f32 %v1576_v14, %v843_v32 }
 0x1b0   : > { %v1293_v34 = vpop.f32.mrf.mxu1 }
 0x1b1   : > { %971 = vst.msk [vmem:[%s1583_s7 + $0x40] sm:$0xff] %vm962_vm2, %v844_v33  ;;  %v859_v35 = vadd.f32 %v1293_v34, %v1576_v14 }
 0x1b2   : > { %v853_v36 = vpop.f32.mrf.mxu1 }
 0x1b3   : > { %974 = vst.msk [vmem:[%s1583_s7 + $0x58] sm:$0xff] %vm962_vm2, %v859_v35  ;;  %v854_v37 = vadd.f32 %v1576_v14, %v853_v36 }
 0x1b4   : > { %v1296_v38 = vpop.f32.mrf.mxu1 }
 0x1b5   : > { %973 = vst.msk [vmem:[%s1583_s7 + $0x50] sm:$0xff] %vm962_vm2, %v854_v37  ;;  %v869_v39 = vadd.f32 %v1296_v38, %v1576_v14 }
 0x1b6   : > { %v863_v40 = vpop.f32.mrf.mxu1 }
 0x1b7   : > { %976 = vst.msk [vmem:[%s1583_s7 + $0x68] sm:$0xff] %vm962_vm2, %v869_v39  ;;  %v864_v41 = vadd.f32 %v1576_v14, %v863_v40 }
 0x1b8   : > { %v1299_v42 = vpop.f32.mrf.mxu1 }
 0x1b9   : > { %975 = vst.msk [vmem:[%s1583_s7 + $0x60] sm:$0xff] %vm962_vm2, %v864_v41  ;;  %v879_v43 = vadd.f32 %v1299_v42, %v1576_v14 }
 0x1ba   : > { %v873_v45 = vpop.f32.mrf.mxu1 }
 0x1bb   : > { %978 = vst.msk [vmem:[%s1583_s7 + $0x78] sm:$0xff] %vm962_vm2, %v879_v43  ;;  %v874_v46 = vadd.f32 %v1576_v14, %v873_v45 }
 0x1bc   : > { %v1302_v47 = vpop.f32.mrf.mxu1 }
 0x1bd   : > { %977 = vst.msk [vmem:[%s1583_s7 + $0x70] sm:$0xff] %vm962_vm2, %v874_v46  ;;  %v889_v48 = vadd.f32 %v1302_v47, %v1576_v14 }
 0x1be   : > { %v883_v49 = vpop.f32.mrf.mxu1 }
 0x1bf   : > { %980 = vst.msk [vmem:[%s1583_s7 + $0x88] sm:$0xff] %vm962_vm2, %v889_v48  ;;  %v884_v50 = vadd.f32 %v1576_v14, %v883_v49 }
 0x1c0   : > { %v1305_v51 = vpop.f32.mrf.mxu1 }
 0x1c1   : > { %979 = vst.msk [vmem:[%s1583_s7 + $0x80] sm:$0xff] %vm962_vm2, %v884_v50  ;;  %v899_v52 = vadd.f32 %v1305_v51, %v1576_v14 }
 0x1c2   : > { %v893_v53 = vpop.f32.mrf.mxu1 }
 0x1c3   : > { %982 = vst.msk [vmem:[%s1583_s7 + $0x98] sm:$0xff] %vm962_vm2, %v899_v52  ;;  %v894_v54 = vadd.f32 %v1576_v14, %v893_v53 }
 0x1c4   : > { %v1308_v55 = vpop.f32.mrf.mxu1 }
 0x1c5   : > { %981 = vst.msk [vmem:[%s1583_s7 + $0x90] sm:$0xff] %vm962_vm2, %v894_v54  ;;  %v909_v56 = vadd.f32 %v1308_v55, %v1576_v14 }
 0x1c6   : > { %v903_v57 = vpop.f32.mrf.mxu1 }
 0x1c7   : > { %984 = vst.msk [vmem:[%s1583_s7 + $0xa8] sm:$0xff] %vm962_vm2, %v909_v56  ;;  %v904_v58 = vadd.f32 %v1576_v14, %v903_v57 }
 0x1c8   : > { %v1311_v59 = vpop.f32.mrf.mxu1 }
 0x1c9   : > { %983 = vst.msk [vmem:[%s1583_s7 + $0xa0] sm:$0xff] %vm962_vm2, %v904_v58  ;;  %v919_v60 = vadd.f32 %v1311_v59, %v1576_v14 }
 0x1ca   : > { %v913_v61 = vpop.f32.mrf.mxu1 }
 0x1cb   : > { %986 = vst.msk [vmem:[%s1583_s7 + $0xb8] sm:$0xff] %vm962_vm2, %v919_v60  ;;  %v914_v62 = vadd.f32 %v1576_v14, %v913_v61 }
 0x1cc   : > { %v1314_v63 = vpop.f32.mrf.mxu1 }
 0x1cd   : > { %985 = vst.msk [vmem:[%s1583_s7 + $0xb0] sm:$0xff] %vm962_vm2, %v914_v62  ;;  %v929_v0 = vadd.f32 %v1314_v63, %v1576_v14 }
 0x1ce   : > { %v923_v1 = vpop.f32.mrf.mxu1 }
 0x1cf   : > { %988 = vst.msk [vmem:[%s1583_s7 + $0xc8] sm:$0xff] %vm962_vm2, %v929_v0  ;;  %v924_v2 = vadd.f32 %v1576_v14, %v923_v1 }
 0x1d0   : > { %v1317_v3 = vpop.f32.mrf.mxu1 }
 0x1d1   : > { %987 = vst.msk [vmem:[%s1583_s7 + $0xc0] sm:$0xff] %vm962_vm2, %v924_v2  ;;  %v939_v4 = vadd.f32 %v1317_v3, %v1576_v14 }
 0x1d2   : > { %v933_v5 = vpop.f32.mrf.mxu1 }
 0x1d3   : > { %990 = vst.msk [vmem:[%s1583_s7 + $0xd8] sm:$0xff] %vm962_vm2, %v939_v4  ;;  %v934_v6 = vadd.f32 %v1576_v14, %v933_v5 }
 0x1d4   : > { %v1320_v7 = vpop.f32.mrf.mxu1 }
 0x1d5   : > { %989 = vst.msk [vmem:[%s1583_s7 + $0xd0] sm:$0xff] %vm962_vm2, %v934_v6  ;;  %v949_v8 = vadd.f32 %v1320_v7, %v1576_v14 }
 0x1d6   : > { %v943_v9 = vpop.f32.mrf.mxu1 }
 0x1d7   : > { %992 = vst.msk [vmem:[%s1583_s7 + $0xe8] sm:$0xff] %vm962_vm2, %v949_v8  ;;  %v944_v10 = vadd.f32 %v1576_v14, %v943_v9 }
 0x1d8   : > { %v1323_v11 = vpop.f32.mrf.mxu1 }
 0x1d9   : > { %991 = vst.msk [vmem:[%s1583_s7 + $0xe0] sm:$0xff] %vm962_vm2, %v944_v10  ;;  %v959_v12 = vadd.f32 %v1323_v11, %v1576_v14 }
 0x1da   : > { %v953_v13 = vpop.f32.mrf.mxu1 }
 0x1db   : > { %994 = vst.msk [vmem:[%s1583_s7 + $0xf8] sm:$0xff] %vm962_vm2, %v959_v12  ;;  %v954_v44 = vadd.f32 %v1576_v14, %v953_v13 }
 0x1dd   : > { %993 = vst.msk [vmem:[%s1583_s7 + $0xf0] sm:$0xff] %vm962_vm2, %v954_v44 }
 0x1de PF: > { %s15_s18 = sadd.s32 1, %s1354_s18  }
 0x1df   : > { %p12_p4 = scmp.ge.s32.totalorder %s15_s18, 5  }
 0x1e1   :  { %14 = sbr.rel (!%p12_p4) target bundleno = 1 (0x1), region = 70 }

</bundles_post_ra>
